<compile_context>
chip_gen: v6e
topology: v6e:2x2x1
jax: 0.10.0
libtpu: 0.0.40
codegen_flags: <defaults>
</compile_context>

<pallas_src>
import functools

import jax
import jax.numpy as jnp
from jax.experimental import pallas as pl
from jax.experimental.pallas import tpu as pltpu

_MIB = 1024 * 1024


def _round_up(x, m):
    return (x + m - 1) // m * m


def _vmem_budget_bytes():
    """Per-step VMEM budget; v7x only has 64 MiB physical VMEM per core."""
    cap = 64 * _MIB
    try:
        info = pltpu.get_tpu_info()
        cap = int(getattr(info, "vmem_capacity_bytes", cap))
    except Exception:
        pass
    return min(40 * _MIB, (cap * 3) // 5)


def _step_vmem_bytes(tl, K, E):
    # x tile (2-buffered bf16) + out tile (2-buffered f32)
    # + weight (conservatively counted 2-buffered bf16) + bias.
    return 2 * K * tl * 2 + 2 * E * tl * 4 + 2 * K * E * 2 + 2 * E * 4


def _choose_tl(B, L, K, E, budget):
    """Token-dim tile: full extent when possible, else a multiple of 256."""
    if L <= 256:
        return L  # single full-extent block (exempt from the 128-lane rule)
    # Full token extent: no wasted MXU columns; batch supplies the >=2 steps.
    if B >= 2 and L <= 2048 and _step_vmem_bytes(L, K, E) <= budget:
        return L
    tl = min(2048, _round_up(L, 256))
    while tl > 256 and _step_vmem_bytes(tl, K, E) > budget:
        tl -= 256
    # Keep at least 2 grid steps so a v7x megacore never idles one TensorCore.
    while tl > 256 and B * pl.cdiv(L, tl) < 2:
        tl -= 256
    return tl


def _patch_embed_kernel(x_ref, w_ref, b_ref, o_ref):
    # x_ref: (1, K, tl) bf16   w_ref: (E, K) bf16
    # b_ref: (E, 1)   f32      o_ref: (1, E, tl) f32
    acc = jnp.dot(w_ref[...], x_ref[0], preferred_element_type=jnp.float32)
    o_ref[0] = acc + b_ref[...]


def _patch_embed_matmul(x_col, w_mat, bias2d):
    """x_col: (B, K, L) bf16, w_mat: (E, K) bf16, bias2d: (E, 1) f32 -> (B, E, L) f32."""
    B, K, L = x_col.shape
    E = w_mat.shape[0]

    budget = _vmem_budget_bytes()
    tl = _choose_tl(B, L, K, E, budget)
    nl = pl.cdiv(L, tl)

    cost = pl.CostEstimate(
        flops=2 * B * L * K * E,
        transcendentals=0,
        bytes_accessed=(B * K * L * 2      # bf16 patches
                        + K * E * 2        # bf16 weight
                        + E * 4            # f32 bias
                        + B * E * L * 4),  # f32 output
    )
    vmem_limit = int(min(max(_step_vmem_bytes(tl, K, E) + 4 * _MIB, 32 * _MIB),
                         60 * _MIB))

    return pl.pallas_call(
        _patch_embed_kernel,
        out_shape=jax.ShapeDtypeStruct((B, E, L), jnp.float32),
        grid_spec=pltpu.PrefetchScalarGridSpec(
            num_scalar_prefetch=0,
            grid=(B, nl),
            in_specs=[
                pl.BlockSpec((1, K, tl), lambda b, l: (b, 0, l)),
                pl.BlockSpec((E, K), lambda b, l: (0, 0)),   # weight resident
                pl.BlockSpec((E, 1), lambda b, l: (0, 0)),   # bias resident
            ],
            out_specs=pl.BlockSpec((1, E, tl), lambda b, l: (b, 0, l)),
        ),
        compiler_params=pltpu.CompilerParams(
            dimension_semantics=("parallel", "parallel"),
            vmem_limit_bytes=vmem_limit),
        cost_estimate=cost,
    )(x_col, w_mat, bias2d)


def patch_embed_forward(x, weight, bias, *, patch_size, tubelet_size):
    """PyTorch-equivalent PatchEmbed.forward (Conv3d with kernel == stride).

    x:      (B, C, T, H, W)            float32
    weight: (E, C, tubelet, ps, ps)    float32 (PyTorch Conv3d OIDHW layout)
    bias:   (E,)
    returns (B, E, T//tubelet, H//ps, W//ps) in x.dtype
    """
    B, C, T, H, W = x.shape
    E = weight.shape[0]
    ps, tub = patch_size, tubelet_size
    Tp, Hp, Wp = T // tub, H // ps, W // ps
    L = Tp * Hp * Wp
    K = C * tub * ps * ps

    # im2col in (B, K, L) layout: a single fused XLA cast+transpose pass.
    # K is ordered (C, kt, kh, kw) to match the flattened OIDHW weight; L is
    # (T', H', W') so the kernel writes channels-first output directly.
    xc = x.astype(jnp.bfloat16).reshape(B, C, Tp, tub, Hp, ps, Wp, ps)
    xc = xc.transpose(0, 1, 3, 5, 7, 2, 4, 6)          # (B, C,kt,kh,kw, T',H',W')
    xc = xc.reshape(B, K, L)

    w_mat = weight.reshape(E, K).astype(jnp.bfloat16)  # (E, K), K=(C,kt,kh,kw)
    bias2d = bias.reshape(E, 1).astype(jnp.float32)

    out = _patch_embed_matmul(xc, w_mat, bias2d)       # (B, E, L) f32
    out = out.reshape(B, E, Tp, Hp, Wp)                # free reshape, no transpose
    return out.astype(x.dtype)


if __name__ == "__main__":
    # Small shapes consistent with the module (scaled down).
    B, C, T, H, W = 2, 4, 4, 16, 16
    patch_size = 8
    tubelet_size = 2
    embed_dim = 32

    key = jax.random.PRNGKey(0)
    kx, kw, kb = jax.random.split(key, 3)
    x = jax.random.normal(kx, (B, C, T, H, W), dtype=jnp.float32)
    weight = jax.random.normal(
        kw, (embed_dim, C, tubelet_size, patch_size, patch_size),
        dtype=jnp.float32) * 0.02
    bias = jax.random.normal(kb, (embed_dim,), dtype=jnp.float32) * 0.02

    fwd = jax.jit(functools.partial(
        patch_embed_forward, patch_size=patch_size, tubelet_size=tubelet_size))
    out = fwd(x, weight, bias)
    jax.block_until_ready(out)

    # Reference: strided 3-D convolution (same semantics as nn.Conv3d), f32.
    ref = jax.lax.conv_general_dilated(
        x, weight,
        window_strides=(tubelet_size, patch_size, patch_size),
        padding="VALID",
        dimension_numbers=("NCDHW", "OIDHW", "NCDHW"),
    ) + bias.reshape(1, embed_dim, 1, 1, 1)

    assert out.shape == (B, embed_dim, T // tubelet_size,
                         H // patch_size, W // patch_size)
    # bf16 MXU inputs with f32 accumulation -> relaxed tolerance vs f32 conv.
    err = float(jnp.max(jnp.abs(out - ref)))
    assert jnp.allclose(out, ref, atol=2e-2, rtol=2e-2), f"max abs err {err}"
    print("KERNEL_OK")
</pallas_src>

<mosaic_0001>
module attributes {stable_mosaic.version = 11 : i64} {
  func.func @_patch_embed_kernel(%arg0: i32, %arg1: i32, %arg2: memref<1x512x8xbf16, #tpu.memory_space<vmem>>, %arg3: memref<32x512xbf16, #tpu.memory_space<vmem>>, %arg4: memref<32x1xf32, #tpu.memory_space<vmem>>, %arg5: memref<1x32x8xf32, #tpu.memory_space<vmem>>) attributes {dimension_semantics = [#tpu.dimension_semantics<parallel>, #tpu.dimension_semantics<parallel>], iteration_bounds = array<i64: 2, 1>, scalar_prefetch = 0 : i64, scratch_operands = 0 : i64, tpu.core_type = #tpu.core_type<tc>, window_params = [{transform_indices = @transform_0, window_bounds = array<i64: 1, 512, 8>}, {pipeline_mode = #tpu.pipeline_mode<synchronous>, transform_indices = @transform_1, window_bounds = array<i64: 32, 512>}, {pipeline_mode = #tpu.pipeline_mode<synchronous>, transform_indices = @transform_2, window_bounds = array<i64: 32, 1>}, {transform_indices = @transform_3, window_bounds = array<i64: 1, 32, 8>}]} {
    %c0 = arith.constant 0 : index
    %c0_0 = arith.constant 0 : index
    %0 = vector.load %arg3[%c0, %c0_0] : memref<32x512xbf16, #tpu.memory_space<vmem>>, vector<32x512xbf16>
    %c0_1 = arith.constant 0 : index
    %c0_2 = arith.constant 0 : index
    %c0_3 = arith.constant 0 : index
    %1 = vector.load %arg2[%c0_1, %c0_2, %c0_3] : memref<1x512x8xbf16, #tpu.memory_space<vmem>>, vector<1x512x8xbf16>
    %2 = vector.shape_cast %1 : vector<1x512x8xbf16> to vector<512x8xbf16>
    %cst = arith.constant dense<0.000000e+00> : vector<32x8xf32>
    %3 = tpu.matmul %0, %2, %cst {dimension_numbers = #tpu.dot_dimension_numbers<[1], [0], [0], [1], [0, 0, 1, 1], [], []>} : vector<32x512xbf16>, vector<512x8xbf16>, vector<32x8xf32> -> vector<32x8xf32>
    %c0_4 = arith.constant 0 : index
    %c0_5 = arith.constant 0 : index
    %4 = vector.load %arg4[%c0_4, %c0_5] : memref<32x1xf32, #tpu.memory_space<vmem>>, vector<32x1xf32>
    %5 = vector.broadcast %4 : vector<32x1xf32> to vector<32x8xf32>
    %6 = arith.addf %3, %5 : vector<32x8xf32>
    %c0_6 = arith.constant 0 : index
    %c0_7 = arith.constant 0 : index
    %c0_8 = arith.constant 0 : index
    %7 = vector.load %arg5[%c0_6, %c0_7, %c0_8] : memref<1x32x8xf32, #tpu.memory_space<vmem>>, vector<1x32x8xf32>
    %8 = vector.shape_cast %7 : vector<1x32x8xf32> to vector<32x8xf32>
    %9 = vector.shape_cast %6 : vector<32x8xf32> to vector<1x32x8xf32>
    tpu.vector_store %arg5[%c0_6, %c0_7, %c0_8], %9 {strides = array<i32>} : memref<1x32x8xf32, #tpu.memory_space<vmem>>, vector<1x32x8xf32>,
    return
  }
  func.func @transform_0(%arg0: i32, %arg1: i32) -> (i32, i32, i32) {
    %c0_i32 = arith.constant 0 : i32
    %c0_i32_0 = arith.constant 0 : i32
    return %arg0, %c0_i32, %arg1 : i32, i32, i32
  }
  func.func @transform_1(%arg0: i32, %arg1: i32) -> (i32, i32) {
    %c0_i32 = arith.constant 0 : i32
    %c0_i32_0 = arith.constant 0 : i32
    %c0_i32_1 = arith.constant 0 : i32
    return %c0_i32, %c0_i32_0 : i32, i32
  }
  func.func @transform_2(%arg0: i32, %arg1: i32) -> (i32, i32) {
    %c0_i32 = arith.constant 0 : i32
    %c0_i32_0 = arith.constant 0 : i32
    %c0_i32_1 = arith.constant 0 : i32
    return %c0_i32, %c0_i32_0 : i32, i32
  }
  func.func @transform_3(%arg0: i32, %arg1: i32) -> (i32, i32, i32) {
    %c0_i32 = arith.constant 0 : i32
    %c0_i32_0 = arith.constant 0 : i32
    return %arg0, %c0_i32, %arg1 : i32, i32, i32
  }
}

</mosaic_0001>

<bundles_post_ra>
// kernel: patch_embed_forward.1
= control target key start
LH: loop header
LB: loop body
LE: loop exit
PB: predicated region body
PF: predicated region fallthrough
CT: control target
= control target key end

     0   :  { %s942_s12 = smov 0   ;;  %s944_s13 = smov 0   ;;  %s1053_s0 = inlined_call_operand.vmem [shape: bf16[2,512,8], index: 0, kind: input, shape index: {}]   ;;  %s1054_s1 = inlined_call_operand.vmem [shape: bf16[32,512], index: 1, kind: input, shape index: {}]   ;;  %s1055_s2 = inlined_call_operand.vmem [shape: f32[32,1], index: 2, kind: input, shape index: {}]   ;;  %s1056_s3 = inlined_call_operand.vmem [shape: f32[2,32,8], index: 3, kind: output, shape index: {}]  }
   0x1   :  { %s946_s14 = smov 0  }
   0x2 LB: > { %s25_s15 = sadd.s32 1, %s915_s13  ;;  %p721_p0 = scmp.ge.s32.totalorder %s919_s14, 1  ;;  %s919_s14 = sphi %s946_s14, %s13_s14   ;;  %s915_s13 = sphi %s944_s13, %s1058_s13   ;;  %s911_s12 = sphi %s942_s12, %s1057_s12  }
   0x3   : > { %p27_p1 = scmp.ge.s32.totalorder %s25_s15, 2  ;;  %p156_p2 = scmp.lt.s32.totalorder %s919_s14, 3 }
   0x5   : > { %s1060_s15 = smov (%p27_p1, %s25_s15), 0  ;;  %p157_p3 = pnand %p721_p0, %p156_p2 }
   0x6   : > { %p186_p4 = scmp.lt.s32.totalorder (!%p157_p3), %s911_s12, 1 }
   0x7   : > { %160 = sbr.rel (%p157_p3) target bundleno = 263 (0x107), region = 32 }
   0xc   : > { %v887_v0 = vld [vmem:[%s1054_s1 + $0x4] ss:$16 sps:$4 sm:$0xff]   ;;  %v921_v1 = vmov 0   ;;  %s1062_s12 = smov (!%p186_p4, %s911_s12), 1  ;;  %v890_v2 = vld [vmem:[%s1054_s1 + $0xc] ss:$16 sps:$4 sm:$0xff]  }
   0xd   : > { %851 = vset.pattern.permute.xlu0 %v921_v1  ;;  %852 = vset.pattern.permute.xlu1 %v921_v1  ;;  %s768_s20 = sshll.u32 %s1062_s12, 8  ;;  %v275_v3 = vld [vmem:[%s1055_s2] sm:$0xff]  ;;  %v277_v4 = vld [vmem:[%s1055_s2 + $0x10] sm:$0xff]  ;;  %v888_v37 = vld [vmem:[%s1054_s1 + $0x8] ss:$16 sps:$4 sm:$0xff]   ;;  %s769_s21 = sshll.u32 %s1062_s12, 5 }
   0xe   : > { %563 = vmatprep.mubr.bf16.mxu0 %v887_v0  ;;  %612 = vmatprep.mubr.bf16.mxu1 %v890_v2  ;;  %s972_s23 = scalar_lea.vmem %s1053_s0, %s768_s20  ;;  %v885_v35 = vld [vmem:[%s1054_s1] ss:$16 sps:$4 sm:$0xff]   ;;  %v891_v39 = vld [vmem:[%s1054_s1 + $0x24] ss:$16 sps:$4 sm:$0xff]   ;;  %v276_v40 = vld [vmem:[%s1055_s2 + $0x8] sm:$0xff]  ;;  %vm629_vm0 = vcmask 64512   ;;  %s201_s24 = scalar_lea.vmem %s1056_s3, %s769_s21 }
   0xf   : > { %v853_v5 = vld [vmem:[%s972_s23 + $0x78] sm:$0xff]   ;;  %281 = vperm.xlu0 %851, %v275_v3   ;;  %291 = vperm.xlu1 %852, %v277_v4   ;;  %v857_v9 = vld [vmem:[%s972_s23 + $0x70] sm:$0xff]   ;;  %v861_v13 = vld [vmem:[%s972_s23 + $0x68] sm:$0xff]  }
  0x10   : > { %v854_v6 = vld [vmem:[%s972_s23 + $0xf8] sm:$0xff]   ;;  %770 = vmatprep.subr.bf16.mxu0 %v853_v5  ;;  %v858_v10 = vld [vmem:[%s972_s23 + $0xf0] sm:$0xff]   ;;  %v862_v14 = vld [vmem:[%s972_s23 + $0xe8] sm:$0xff]  }
  0x11   : > { %v855_v7 = vld [vmem:[%s972_s23 + $0x38] sm:$0xff]   ;;  %798 = vmatprep.subr.bf16.mxu1 %v854_v6  ;;  %v859_v11 = vld [vmem:[%s972_s23 + $0x30] sm:$0xff]   ;;  %v863_v15 = vld [vmem:[%s972_s23 + $0x28] sm:$0xff]  }
  0x12   : > { %v856_v8 = vld [vmem:[%s972_s23 + $0xb8] sm:$0xff]   ;;  %771 = vmatpush3.bf16.msra.mxu0 %v855_v7  ;;  %v860_v12 = vld [vmem:[%s972_s23 + $0xb0] sm:$0xff]   ;;  %v864_v16 = vld [vmem:[%s972_s23 + $0xa8] sm:$0xff]  }
  0x13   : > { %799 = vmatpush3.bf16.msra.mxu1 %v856_v8  ;;  %772 = vmatprep.subr.bf16.mxu0 %v857_v9  ;;  %v865_v17 = vld [vmem:[%s972_s23 + $0x60] sm:$0xff]   ;;  %v869_v21 = vld [vmem:[%s972_s23 + $0x58] sm:$0xff]   ;;  %v873_v25 = vld [vmem:[%s972_s23 + $0x50] sm:$0xff]  }
  0x14   : > { %800 = vmatprep.subr.bf16.mxu1 %v858_v10  ;;  %v866_v18 = vld [vmem:[%s972_s23 + $0xe0] sm:$0xff]   ;;  %v870_v22 = vld [vmem:[%s972_s23 + $0xd8] sm:$0xff]   ;;  %v874_v26 = vld [vmem:[%s972_s23 + $0xd0] sm:$0xff]   ;;  %286 = vperm.xlu0 %851, %v276_v40  }
  0x15   : > { %v867_v19 = vld [vmem:[%s972_s23 + $0x20] sm:$0xff]   ;;  %v871_v23 = vld [vmem:[%s972_s23 + $0x18] sm:$0xff]   ;;  %v875_v27 = vld [vmem:[%s972_s23 + $0x10] sm:$0xff]  }
  0x16   : > { %773 = vmatpush3.bf16.msra.mxu0 %v859_v11  ;;  %v868_v20 = vld [vmem:[%s972_s23 + $0xa0] sm:$0xff]   ;;  %v872_v24 = vld [vmem:[%s972_s23 + $0x98] sm:$0xff]   ;;  %v876_v28 = vld [vmem:[%s972_s23 + $0x90] sm:$0xff]  }
  0x17   : > { %801 = vmatpush3.bf16.msra.mxu1 %v860_v12  ;;  %774 = vmatprep.subr.bf16.mxu0 %v861_v13  ;;  %v877_v29 = vld [vmem:[%s972_s23 + $0x48] sm:$0xff]   ;;  %v881_v33 = vld [vmem:[%s972_s23 + $0x40] sm:$0xff]   ;;  %v278_v41 = vld [vmem:[%s1055_s2 + $0x18] sm:$0xff] }
  0x18   : > { %802 = vmatprep.subr.bf16.mxu1 %v862_v14  ;;  %v878_v30 = vld [vmem:[%s972_s23 + $0xc8] sm:$0xff]   ;;  %v882_v34 = vld [vmem:[%s972_s23 + $0xc0] sm:$0xff]   ;;  %296 = vperm.xlu1 %852, %v278_v41  }
  0x19   : > { %v879_v31 = vld [vmem:[%s972_s23 + $0x8] sm:$0xff]   ;;  %v883_v36 = vld [vmem:[%s972_s23] sm:$0xff]  }
  0x1a   : > { %775 = vmatpush3.bf16.msra.mxu0 %v863_v15  ;;  %v880_v32 = vld [vmem:[%s972_s23 + $0x88] sm:$0xff]   ;;  %v884_v38 = vld [vmem:[%s972_s23 + $0x80] sm:$0xff]  }
  0x1b   : > { %803 = vmatpush3.bf16.msra.mxu1 %v864_v16  ;;  %776 = vmatprep.subr.bf16.mxu0 %v865_v17  ;;  %v893_v42 = vld [vmem:[%s1054_s1 + $0x2c] ss:$16 sps:$4 sm:$0xff]   ;;  %v895_v43 = vld [vmem:[%s1054_s1 + $0x20] ss:$16 sps:$4 sm:$0xff]   ;;  %v896_v44 = vld [vmem:[%s1054_s1 + $0x28] ss:$16 sps:$4 sm:$0xff]  }
  0x1c   : > { %804 = vmatprep.subr.bf16.mxu1 %v866_v18 }
  0x1e   : > { %777 = vmatpush3.bf16.msra.mxu0 %v867_v19 }
  0x1f   : > { %805 = vmatpush3.bf16.msra.mxu1 %v868_v20  ;;  %778 = vmatprep.subr.bf16.mxu0 %v869_v21 }
  0x20   : > { %806 = vmatprep.subr.bf16.mxu1 %v870_v22 }
  0x22   : > { %779 = vmatpush3.bf16.msra.mxu0 %v871_v23 }
  0x23   : > { %807 = vmatpush3.bf16.msra.mxu1 %v872_v24  ;;  %780 = vmatprep.subr.bf16.mxu0 %v873_v25 }
  0x24   : > { %808 = vmatprep.subr.bf16.mxu1 %v874_v26 }
  0x26   : > { %781 = vmatpush3.bf16.msra.mxu0 %v875_v27 }
  0x27   : > { %809 = vmatpush3.bf16.msra.mxu1 %v876_v28  ;;  %782 = vmatprep.subr.bf16.mxu0 %v877_v29 }
  0x28   : > { %810 = vmatprep.subr.bf16.mxu1 %v878_v30 }
  0x2a   : > { %783 = vmatpush3.bf16.msra.mxu0 %v879_v31 }
  0x2b   : > { %811 = vmatpush3.bf16.msra.mxu1 %v880_v32  ;;  %784 = vmatprep.subr.bf16.mxu0 %v881_v33 }
  0x2c   : > { %812 = vmatprep.subr.bf16.mxu1 %v882_v34 }
  0x2e   : > { %785 = vmatpush3.bf16.msra.mxu0 %v883_v36 }
  0x2f   : > { %813 = vmatpush3.bf16.msra.mxu1 %v884_v38 }
  0x31   : > { %564 = vmatmul.mubr.bf16.vlgmr.msra.gmra.mxu0 %v885_v35 }
  0x32   : > { %613 = vmatmul.mubr.bf16.vlgmr.msra.gmra.mxu1 %v888_v37  ;;  %571 = vmatprep.mubr.bf16.mxu0 %v891_v39 }
  0x33   : > { %620 = vmatprep.mubr.bf16.mxu1 %v893_v42 }
  0x39   : > { %572 = vmatmul.mubr.bf16.gmra.mxu0 %v895_v43 }
  0x3a   : > { %621 = vmatmul.mubr.bf16.gmra.mxu1 %v896_v44 }
  0x8a   : > { %v282_v46 = vpop.permute.xlu0 %281  ;;  %v292_v0 = vpop.permute.xlu1 %291 }
  0x8f   : > { %v287_v56 = vpop.permute.xlu0 %286 }
  0x93   : > { %v297_v13 = vpop.permute.xlu1 %296 }
  0xf1   : > { %v786_v45 = vpop.f32.mrf.mxu0 }
  0xf2   : > { %v814_v47 = vpop.f32.mrf.mxu1 }
  0xf3   : > { %v787_v48 = vpop.f32.mrf.mxu0 }
  0xf4   : > { %v788_v49 = vadd.f32 %v787_v48, %v786_v45  ;;  %v815_v50 = vpop.f32.mrf.mxu1 }
  0xf5   : > { %v789_v51 = vpop.f32.mrf.mxu0  ;;  %v816_v52 = vadd.f32 %v815_v50, %v814_v47 }
  0xf6   : > { %v566_v53 = vadd.f32 %v788_v49, %v282_v46  ;;  %v817_v54 = vpop.f32.mrf.mxu1 }
  0xf7   : > { %v790_v55 = vpop.f32.mrf.mxu0 }
  0xf8   : > { %v615_v57 = vadd.f32 %v816_v52, %v566_v53  ;;  %v791_v58 = vadd.f32 %v790_v55, %v789_v51  ;;  %v818_v59 = vpop.f32.mrf.mxu1 }
  0xf9   : > { %v792_v60 = vpop.f32.mrf.mxu0  ;;  %v819_v61 = vadd.f32 %v818_v59, %v817_v54 }
  0xfa   : > { %630 = vst.msk [vmem:[%s201_s24] sm:$0xff] %vm629_vm0, %v615_v57  ;;  %v569_v62 = vadd.f32 %v791_v58, %v287_v56  ;;  %v820_v63 = vpop.f32.mrf.mxu1 }
  0xfb   : > { %v793_v1 = vpop.f32.mrf.mxu0 }
  0xfc   : > { %v618_v2 = vadd.f32 %v819_v61, %v569_v62  ;;  %v794_v3 = vadd.f32 %v793_v1, %v792_v60  ;;  %v821_v4 = vpop.f32.mrf.mxu1 }
  0xfd   : > { %v795_v5 = vpop.f32.mrf.mxu0  ;;  %v822_v7 = vadd.f32 %v821_v4, %v820_v63 }
  0xfe   : > { %631 = vst.msk [vmem:[%s201_s24 + $0x8] sm:$0xff] %vm629_vm0, %v618_v2  ;;  %v574_v6 = vadd.f32 %v794_v3, %v292_v0  ;;  %v823_v8 = vpop.f32.mrf.mxu1 }
  0xff   : > { %v796_v9 = vpop.f32.mrf.mxu0 }
 0x100   : > { %v623_v10 = vadd.f32 %v822_v7, %v574_v6  ;;  %v797_v11 = vadd.f32 %v796_v9, %v795_v5  ;;  %v824_v12 = vpop.f32.mrf.mxu1 }
 0x101   : > { %v825_v15 = vadd.f32 %v824_v12, %v823_v8 }
 0x102   : > { %632 = vst.msk [vmem:[%s201_s24 + $0x10] sm:$0xff] %vm629_vm0, %v623_v10  ;;  %v577_v14 = vadd.f32 %v797_v11, %v297_v13 }
 0x104   : > { %v626_v16 = vadd.f32 %v825_v15, %v577_v14 }
 0x106   : > { %633 = vst.msk [vmem:[%s201_s24 + $0x18] sm:$0xff] %vm629_vm0, %v626_v16 }
 0x107 PF: > { %s13_s14 = sadd.s32 1, %s919_s14   ;;  %s1057_s12 = smov %s915_s13 }
 0x108   : > { %p10_p5 = scmp.ge.s32.totalorder %s13_s14, 4   ;;  %s1058_s13 = smov %s1060_s15 }
 0x10a   :  { %12 = sbr.rel (!%p10_p5) target bundleno = 2 (0x2), region = 62 }

</bundles_post_ra>
